<compile_context>
chip_gen: v5e
topology: v5e:2x2
jax: 0.10.0
libtpu: 0.0.40
codegen_flags: <defaults>
</compile_context>

<pallas_src>
import math

import jax
import jax.numpy as jnp
from jax.experimental import pallas as pl
from jax.experimental.pallas import tpu as pltpu


def _round_up(v, m):
    return ((v + m - 1) // m) * m


def _pick_tile(n, max_tile, quantum=256):
    """Largest multiple of `quantum` (or n itself) that divides n, <= max_tile."""
    if n <= max_tile:
        return n
    t = (max_tile // quantum) * quantum
    while t > quantum and n % t:
        t -= quantum
    return t


def _footprint(bt, tm, tk, fo, in_bytes, out_bytes):
    """Approximate double-buffered VMEM bytes for one grid step."""
    return (2 * bt * tm * tk * in_bytes      # adj tiles (double-buffered)
            + 2 * bt * tk * fo * in_bytes    # xw tiles
            + 2 * bt * tm * fo * out_bytes   # output tiles
            + bt * tm * fo * 4)              # f32 accumulator


def _prep(arr, shape, dtype):
    """Cast + zero-pad, creating an HBM copy only when actually needed."""
    if arr.dtype != dtype:
        arr = arr.astype(dtype)
    pads = tuple((0, t - s) for s, t in zip(arr.shape, shape))
    if any(p for _, p in pads):
        arr = jnp.pad(arr, pads)
    return arr


def _graph_conv_kernel(xw_ref, adj_ref, o_ref, acc_ref):
    """One (batch-tile, row-tile, k-tile) step of out = adj @ xw."""
    k = pl.program_id(2)

    @pl.when(k == 0)
    def _():
        acc_ref[...] = jnp.zeros_like(acc_ref)

    # Batched MXU matmul over the folded-batch dim; f32 accumulation.
    acc_ref[...] += jnp.einsum(
        "bmk,bkn->bmn", adj_ref[...], xw_ref[...],
        preferred_element_type=jnp.float32)

    @pl.when(k == pl.num_programs(2) - 1)
    def _():
        o_ref[...] = acc_ref[...].astype(o_ref.dtype)


def graph_conv(x, adj, weight, D=None, *, compute_dtype=None):
    """Pallas GraphConv forward: adj @ (x @ weight) [* 1/D].

    x:      (B, N, F_in) or (N, F_in)
    adj:    (B, N, N)    or (N, N)   (dense; torch.spmm path is densified)
    weight: (F_in, F_out)
    D:      optional divisor. A Python scalar is folded into the weight; an
            array is applied to the output (broadcasting, like torch).
    compute_dtype: optional dtype for the streamed adj / xw operands
            (e.g. jnp.bfloat16); accumulation stays float32.
    """
    squeeze_out = False
    if x.ndim == 2:
        # torch.mm / torch.spmm path -> batch of 1.
        x = x[None]
        adj = adj[None]
        squeeze_out = True

    B, N, F_in = x.shape
    F_out = weight.shape[1]
    out_dtype = x.dtype
    if compute_dtype is None:
        compute_dtype = x.dtype
    in_b = jnp.dtype(compute_dtype).itemsize
    out_b = jnp.dtype(out_dtype).itemsize

    # Fold a scalar 1/D into the (tiny) weight once, in XLA; a non-scalar D
    # is applied to the output after the kernel.
    post_div = None
    if D is None:
        w_scaled = weight
    elif isinstance(D, (int, float)):
        w_scaled = weight * (1.0 / float(D))
    else:
        w_scaled = weight
        post_div = D

    # Precompute xw = x @ W with XLA (non-dominant matmul); it is cast to
    # compute_dtype in HBM below so the kernel streams narrow data.
    xw = jnp.einsum("bnf,fo->bno", x, w_scaled)

    LANE = 128
    fo_p = _round_up(F_out, LANE)

    if N <= 512:
        # Whole graph in one (tm, tk) tile; fold many graphs per grid step to
        # amortize the ~0.35 us per-step overhead on tiny shapes.
        n_pad = _round_up(N, 16)
        tm = tk = n_pad
        bt = max(1, min(B, 64))
        while bt > 1 and _footprint(bt, tm, tk, fo_p, in_b, out_b) > (16 << 20):
            bt //= 2
        if B > 1:
            # Keep >= 2 batch grid steps so both v7x TensorCores get work.
            bt = min(bt, -(-B // 2))
    else:
        # Tiled path: 256-quantum padding (adj bytes scale with n_pad^2, so a
        # small quantum matters) and the largest divisor tiles that fit a
        # ~24 MiB double-buffered budget (v7x: 64 MiB VMEM per TensorCore).
        n_pad = _round_up(N, 256)
        bt = 1
        tm = _pick_tile(n_pad, 512)
        tk = _pick_tile(n_pad, 2048)
        while _footprint(bt, tm, tk, fo_p, in_b, out_b) > (24 << 20) and tk > 256:
            tk = _pick_tile(n_pad, tk - 256)
        while _footprint(bt, tm, tk, fo_p, in_b, out_b) > (24 << 20) and tm > 256:
            tm = _pick_tile(n_pad, tm - 256)

    b_pad = _round_up(B, bt)

    # Zero padding is inert: padded adj columns / xw rows contribute exactly
    # 0 to every accumulated sum; padded output rows/cols/batches are sliced
    # off below.  _prep only copies when a cast or padding is needed.
    xw_p = _prep(xw, (b_pad, n_pad, fo_p), compute_dtype)
    adj_p = _prep(adj, (b_pad, n_pad, n_pad), compute_dtype)

    grid = (b_pad // bt, n_pad // tm, n_pad // tk)

    fp = _footprint(bt, tm, tk, fo_p, in_b, out_b)
    vmem_limit = int(min(40 << 20, max(16 << 20, fp + fp // 2 + (4 << 20))))

    flops = 2 * B * N * N * F_out
    bytes_accessed = int(adj_p.size * in_b + xw_p.size * in_b
                         + b_pad * n_pad * fo_p * out_b)

    out = pl.pallas_call(
        _graph_conv_kernel,
        out_shape=jax.ShapeDtypeStruct((b_pad, n_pad, fo_p), out_dtype),
        grid_spec=pltpu.PrefetchScalarGridSpec(
            num_scalar_prefetch=0,
            grid=grid,
            in_specs=[
                # xw tile depends only on (batch, k).
                pl.BlockSpec((bt, tk, fo_p), lambda b, i, k: (b, k, 0)),
                # adj tile depends on (batch, row, k) -> the dominant stream.
                pl.BlockSpec((bt, tm, tk), lambda b, i, k: (b, i, k)),
            ],
            out_specs=pl.BlockSpec((bt, tm, fo_p), lambda b, i, k: (b, i, 0)),
            scratch_shapes=[pltpu.VMEM((bt, tm, fo_p), jnp.float32)],
        ),
        compiler_params=pltpu.CompilerParams(
            dimension_semantics=("parallel", "parallel", "arbitrary"),
            vmem_limit_bytes=vmem_limit,
        ),
        cost_estimate=pl.CostEstimate(flops=flops, transcendentals=0,
                                      bytes_accessed=bytes_accessed),
    )(xw_p, adj_p)

    out = out[:B, :N, :F_out]
    if post_div is not None:
        out = out / post_div
    if squeeze_out:
        out = out[0]
    return out


def init_graph_conv_params(key, in_features, out_features, bias=False,
                           dtype=jnp.float32):
    """Deterministic re-implementation of GraphConv.reset_parameters()."""
    stdv = 1.0 / math.sqrt(out_features)
    kw, kb = jax.random.split(key)
    weight = jax.random.uniform(kw, (in_features, out_features),
                                minval=-stdv, maxval=stdv, dtype=dtype)
    if bias:
        # NOTE: the reference forward() never adds the bias, so neither do we.
        b = jax.random.uniform(kb, (out_features,), minval=-stdv, maxval=stdv,
                               dtype=dtype)
        return weight, b
    return weight, None


if __name__ == "__main__":
    key = jax.random.PRNGKey(0)
    k_x, k_adj, k_w, k_x2, k_adj2 = jax.random.split(key, 5)

    # --- small batched 3-D path ---
    B, N, F_in, F_out = 2, 16, 32, 32
    x = jax.random.normal(k_x, (B, N, F_in), dtype=jnp.float32)
    adj = jax.random.uniform(k_adj, (B, N, N), dtype=jnp.float32)
    weight, _ = init_graph_conv_params(k_w, F_in, F_out, bias=False)

    out = jax.block_until_ready(graph_conv(x, adj, weight, D=None))
    ref = jnp.einsum("bij,bjf->bif", adj, jnp.einsum("bni,io->bno", x, weight))
    assert out.shape == ref.shape
    assert jnp.allclose(out, ref, atol=1e-3, rtol=1e-3)

    # --- 2-D (torch.mm / torch.spmm) path with the scalar D divisor ---
    out2 = jax.block_until_ready(graph_conv(x[0], adj[0], weight, D=4.0))
    ref2 = (adj[0] @ (x[0] @ weight)) / 4.0
    assert jnp.allclose(out2, ref2, atol=1e-3, rtol=1e-3)

    # --- bf16-compute path: adj/xw are stored bf16 in HBM (halves the
    #     dominant stream); accumulation stays f32 ---
    out3 = jax.block_until_ready(
        graph_conv(x, adj, weight, compute_dtype=jnp.bfloat16))
    assert jnp.allclose(out3, ref, atol=1e-1, rtol=5e-2)

    # --- larger, unaligned graph exercising the tiled accumulating path
    #     (multiple row tiles and k tiles, padding sliced off) ---
    Nb = 2300
    xb = jax.random.normal(k_x2, (1, Nb, F_in), dtype=jnp.float32)
    adjb = jax.random.uniform(k_adj2, (1, Nb, Nb), dtype=jnp.float32)
    outb = jax.block_until_ready(graph_conv(xb, adjb, weight, D=2.0))
    refb = jnp.einsum("bij,bjf->bif", adjb,
                      jnp.einsum("bni,io->bno", xb, weight)) / 2.0
    assert outb.shape == refb.shape
    assert jnp.allclose(outb, refb, atol=1e-2, rtol=2e-3)

    print("KERNEL_OK")
</pallas_src>

<mosaic_0001>
module attributes {stable_mosaic.version = 11 : i64} {
  func.func @_graph_conv_kernel(%arg0: i32, %arg1: i32, %arg2: i32, %arg3: memref<1x16x128xf32, #tpu.memory_space<vmem>>, %arg4: memref<1x16x16xf32, #tpu.memory_space<vmem>>, %arg5: memref<1x16x128xf32, #tpu.memory_space<vmem>>, %arg6: memref<1x16x128xf32, #tpu.memory_space<vmem>>) attributes {dimension_semantics = [#tpu.dimension_semantics<parallel>, #tpu.dimension_semantics<parallel>, #tpu.dimension_semantics<arbitrary>], iteration_bounds = array<i64: 2, 1, 1>, scalar_prefetch = 0 : i64, scratch_operands = 1 : i64, tpu.core_type = #tpu.core_type<tc>, window_params = [{transform_indices = @transform_0, window_bounds = array<i64: 1, 16, 128>}, {transform_indices = @transform_1, window_bounds = array<i64: 1, 16, 16>}, {transform_indices = @transform_2, window_bounds = array<i64: 1, 16, 128>}]} {
    %c0_i32 = arith.constant 0 : i32
    %0 = arith.cmpi eq, %arg2, %c0_i32 : i32
    %1 = arith.extui %0 : i1 to i32
    %c0_i32_0 = arith.constant 0 : i32
    %2 = arith.cmpi ne, %1, %c0_i32_0 : i32
    scf.if %2 {
      %cst_14 = arith.constant 0.000000e+00 : f32
      %12 = vector.broadcast %cst_14 : f32 to vector<1x16x128xf32>
      %c0_15 = arith.constant 0 : index
      %c0_16 = arith.constant 0 : index
      %c0_17 = arith.constant 0 : index
      %13 = vector.load %arg6[%c0_15, %c0_16, %c0_17] : memref<1x16x128xf32, #tpu.memory_space<vmem>>, vector<1x16x128xf32>
      tpu.vector_store %arg6[%c0_15, %c0_16, %c0_17], %12 {strides = array<i32>} : memref<1x16x128xf32, #tpu.memory_space<vmem>>, vector<1x16x128xf32>,
    } else {
    }
    %c0 = arith.constant 0 : index
    %c0_1 = arith.constant 0 : index
    %c0_2 = arith.constant 0 : index
    %3 = vector.load %arg6[%c0, %c0_1, %c0_2] : memref<1x16x128xf32, #tpu.memory_space<vmem>>, vector<1x16x128xf32>
    %c0_3 = arith.constant 0 : index
    %c0_4 = arith.constant 0 : index
    %c0_5 = arith.constant 0 : index
    %4 = vector.load %arg4[%c0_3, %c0_4, %c0_5] : memref<1x16x16xf32, #tpu.memory_space<vmem>>, vector<1x16x16xf32>
    %c0_6 = arith.constant 0 : index
    %c0_7 = arith.constant 0 : index
    %c0_8 = arith.constant 0 : index
    %5 = vector.load %arg3[%c0_6, %c0_7, %c0_8] : memref<1x16x128xf32, #tpu.memory_space<vmem>>, vector<1x16x128xf32>
    "tpu.trace_start"() <{level = 10 : i32, message = "bmk,bkn->bmn"}> : () -> ()
    %cst = arith.constant dense<0.000000e+00> : vector<1x16x128xf32>
    %6 = tpu.matmul %4, %5, %cst {dimension_numbers = #tpu.dot_dimension_numbers<[2], [1], [1], [2], [0, 0, 0, 1, 1, 2], [0], [0]>} : vector<1x16x16xf32>, vector<1x16x128xf32>, vector<1x16x128xf32> -> vector<1x16x128xf32>
    "tpu.trace_stop"() : () -> ()
    %7 = arith.addf %3, %6 : vector<1x16x128xf32>
    %c0_9 = arith.constant 0 : index
    %c0_10 = arith.constant 0 : index
    %c0_11 = arith.constant 0 : index
    %8 = vector.load %arg6[%c0_9, %c0_10, %c0_11] : memref<1x16x128xf32, #tpu.memory_space<vmem>>, vector<1x16x128xf32>
    tpu.vector_store %arg6[%c0_9, %c0_10, %c0_11], %7 {strides = array<i32>} : memref<1x16x128xf32, #tpu.memory_space<vmem>>, vector<1x16x128xf32>,
    %c0_i32_12 = arith.constant 0 : i32
    %9 = arith.cmpi eq, %arg2, %c0_i32_12 : i32
    %10 = arith.extui %9 : i1 to i32
    %c0_i32_13 = arith.constant 0 : i32
    %11 = arith.cmpi ne, %10, %c0_i32_13 : i32
    scf.if %11 {
      %c0_14 = arith.constant 0 : index
      %c0_15 = arith.constant 0 : index
      %c0_16 = arith.constant 0 : index
      %12 = vector.load %arg6[%c0_14, %c0_15, %c0_16] : memref<1x16x128xf32, #tpu.memory_space<vmem>>, vector<1x16x128xf32>
      %c0_17 = arith.constant 0 : index
      %c0_18 = arith.constant 0 : index
      %c0_19 = arith.constant 0 : index
      %13 = vector.load %arg5[%c0_17, %c0_18, %c0_19] : memref<1x16x128xf32, #tpu.memory_space<vmem>>, vector<1x16x128xf32>
      tpu.vector_store %arg5[%c0_17, %c0_18, %c0_19], %12 {strides = array<i32>} : memref<1x16x128xf32, #tpu.memory_space<vmem>>, vector<1x16x128xf32>,
    } else {
    }
    return
  }
  func.func @transform_0(%arg0: i32, %arg1: i32, %arg2: i32) -> (i32, i32, i32) {
    %c0_i32 = arith.constant 0 : i32
    %c0_i32_0 = arith.constant 0 : i32
    return %arg0, %arg2, %c0_i32 : i32, i32, i32
  }
  func.func @transform_1(%arg0: i32, %arg1: i32, %arg2: i32) -> (i32, i32, i32) {
    %c0_i32 = arith.constant 0 : i32
    return %arg0, %arg1, %arg2 : i32, i32, i32
  }
  func.func @transform_2(%arg0: i32, %arg1: i32, %arg2: i32) -> (i32, i32, i32) {
    %c0_i32 = arith.constant 0 : i32
    %c0_i32_0 = arith.constant 0 : i32
    return %arg0, %arg1, %c0_i32 : i32, i32, i32
  }
}

</mosaic_0001>

<bundles_post_ra>
// kernel: tpu_custom_call.1
= control target key start
LH: loop header
LB: loop body
LE: loop exit
PB: predicated region body
PF: predicated region fallthrough
CT: control target
= control target key end

     0   :  { %7 = vsyncpa [#allocation4], 0  ;;  %s834_s0 = inlined_call_operand.hbm [shape: f32[2,16,128], index: 0, kind: input, shape index: {}]   ;;  %s835_s1 = inlined_call_operand.hbm [shape: f32[2,16,16], index: 1, kind: input, shape index: {}]   ;;  %s836_s2 = inlined_call_operand.hbm [shape: f32[2,16,128], index: 2, kind: output, shape index: {}]  }
   0x1   :  { %9 = vsyncpa [#allocation4 + $0x1], 0 }
   0x2   :  { %10 = vsyncpa [#allocation7], 0 }
   0x3   :  { %12 = vsyncpa [#allocation7 + $0x1], 0 }
   0x4   :  { %13 = vsyncpa [#allocation5], 0 }
   0x5   :  { %15 = vsyncpa [#allocation5 + $0x1], 0  ;;  %s693_s9 = smov 0   ;;  %s695_s10 = smov 0  }
   0x6   :  { %s697_s11 = smov 0   ;;  %s699_s12 = smov 0  }
   0x7   :  { %s701_s13 = smov 0   ;;  %s703_s14 = smov 0  }
   0x8 LB: > { %s429_s15 = sadd.s32 4294967295, %s672_s14   ;;  %s430_s16 = sadd.s32 4294967294, %s672_s14   ;;  %s672_s14 = sphi %s703_s14, %s21_s14   ;;  %s668_s13 = sphi %s701_s13, %s846_s13   ;;  %s664_s12 = sphi %s699_s12, %s845_s12   ;;  %s660_s11 = sphi %s697_s11, %s844_s11   ;;  %s656_s10 = sphi %s695_s10, %s843_s10   ;;  %s652_s9 = sphi %s693_s9, %s842_s9  }
   0x9   : > { %s40_s17 = sadd.s32 1, %s668_s13  ;;  %s49_s18 = sadd.s32 1, %s660_s11 }
   0xa   : > { %p42_p0 = scmp.ge.s32.totalorder %s40_s17, 2  ;;  %p56_p1 = scmp.ne.s32.totalorder %s660_s11, %s656_s10 }
   0xb   : > { %p57_p2 = scmp.eq.s32.totalorder %s672_s14, 0  ;;  %p62_p3 = scmp.ne.s32.totalorder %s656_s10, %s652_s9 }
   0xc   : > { %s848_s17 = smov (%p42_p0, %s40_s17), 0  ;;  %p63_p5 = scmp.eq.s32.totalorder %s429_s15, 0 }
   0xd   : > { %p734_p4 = por %p57_p2, %p56_p1  ;;  %s44_s20 = ssub.s32 %s668_s13, %s848_s17 }
   0xe   : > { %p118_p6 = scmp.eq.s32.totalorder %s429_s15, 1  ;;  %p47_p7 = scmp.eq.s32.totalorder %s44_s20, 0 }
   0xf   : > { %p740_p8 = por %p63_p5, %p62_p3  ;;  %p124_p10 = scmp.eq.s32.totalorder %s430_s16, 1 }
  0x10   : > { %p744_p9 = por %p118_p6, %p56_p1  ;;  %p432_p12 = scmp.ge.s32.totalorder %s672_s14, 2 }
  0x11   : > { %s749_s23 = scalar_select %p47_p7, %s660_s11, %s49_s18  }
  0x12   : > { %p751_p11 = por %p124_p10, %p62_p3  ;;  %p472_p13 = scmp.lt.s32.totalorder %s672_s14, 2 }
  0x13   : > { %s758_s25 = sand.u32 1, %s660_s11   ;;  %s450_s27 = sshll.u32 %s668_s13, 4 }
  0x14   : > { %s433_s26 = sshll.u32 %s758_s25, 4  ;;  %s155_s30 = scalar_lea.hbm %s834_s0, %s450_s27 }
  0x15   : > { %s148_s3 = scalar_lea.vmem [#allocation3], %s433_s26  ;;  %s156_s5 = sshll.u32 %s155_s30, 4  ;;  %s157_s5 = int_to_ptr.hbm [resolvable:$true] %s156_s5 }
  0x16   : > { %s158_s4 = sshll.u32 %s148_s3, 4  ;;  %p767_p0 = pnand %p472_p13, %p734_p4  ;;  %s159_s4 = int_to_ptr.vmem [resolvable:$true] %s158_s4 }
  0x17   : > { %p439_p1 = scmp.ge.s32.totalorder %s672_s14, 1  ;;  %s145_s7 = scalar_lea.sflag [#allocation4], %s758_s25 }
  0x18   : > { %s674_s8 = smov 128   ;;  %s675_s15 = smov 8  }
  0x19   : > { %464 = dma.hbm_to_vmem [thread:$0]  (!%p767_p0), %s157_s5, 256, %s159_s4, %s145_s7, %s674_s8, %s674_s8, %s675_s15  }
  0x1a   : > { %p191_p2 = scmp.lt.s32.totalorder %s672_s14, 3  ;;  %s180_s20 = scalar_lea.hbm %s835_s1, %s450_s27 }
  0x1b   : > { %s181_s28 = sshll.u32 %s180_s20, 4  ;;  %s172_s19 = scalar_lea.vmem [#allocation6], %s433_s26  ;;  %s182_s28 = int_to_ptr.hbm [resolvable:$true] %s181_s28 }
  0x1c   : > { %p192_p3 = pnand %p439_p1, %p191_p2  ;;  %s183_s29 = sshll.u32 %s172_s19, 4  ;;  %s184_s29 = int_to_ptr.vmem [resolvable:$true] %s183_s29 }
  0x1d   : > { %s169_s30 = scalar_lea.sflag [#allocation7], %s758_s25  ;;  %s783_s3 = sand.u32 (!%p192_p3), 1, %s656_s10  }
  0x1e   : > { %467 = dma.hbm_to_vmem [thread:$0]  (!%p767_p0), %s182_s28, 256, %s184_s29, %s169_s30, %s674_s8, %s674_s8, %s675_s15  }
  0x1f   : > { %195 = sbr.rel (%p192_p3) target bundleno = 174 (0xae), region = 28  ;;  %s440_s4 = sshll.u32 (!%p192_p3), %s783_s3, 4 }
  0x20   : > { %s198_s5 = scalar_lea.sflag (!%p192_p3), [#allocation4], %s783_s3  ;;  %s201_s7 = scalar_lea.vmem (!%p192_p3), [#allocation3], %s440_s4 }
  0x24   : > { %639 = dma.done.wait (%p740_p8), %s198_s5, 256  }
  0x25   : > { %641 = vsyncadd (%p740_p8), %s198_s5, 4294967040  ;;  %s208_s25 = scalar_lea.sflag [#allocation7], %s783_s3  ;;  %s211_s26 = scalar_lea.vmem [#allocation6], %s440_s4 }
  0x26   : > { %643 = dma.done.wait (%p740_p8), %s208_s25, 256  }
  0x27   : > { %645 = vsyncadd (%p740_p8), %s208_s25, 4294967040  ;;  %v252_v0 = vld [vmem:[%s201_s7 + $0x8] sm:$0xff]  ;;  %v251_v1 = vld [vmem:[%s201_s7] sm:$0xff]  ;;  %vm253_vm0 = vcmask 130048   ;;  %s452_s27 = sshll.u32 %s664_s12, 4  ;;  %s237_s15 = scalar_lea.vmem [#allocation8], %s440_s4 }
  0x28   : > { %274 = vmatpush.msra.mxu0 %v252_v0  ;;  %453 = vmatpush.msra.mxu1 %v252_v0  ;;  %v249_v2 = vld [vmem:[%s211_s26] sm:$0xff]  ;;  %v250_v3 = vld [vmem:[%s211_s26 + $0x8] sm:$0xff]  ;;  %s308_s21 = scalar_lea.hbm %s836_s2, %s452_s27  ;;  %s309_s16 = sshll.u32 %s237_s15, 4  ;;  %s310_s16 = int_to_ptr.vmem [resolvable:$true] %s309_s16 }
  0x29   : > { %s311_s18 = sshll.u32 %s308_s21, 4  ;;  %s295_s20 = scalar_lea.sflag [#allocation5], %s783_s3  ;;  %s312_s18 = int_to_ptr.hbm [resolvable:$true] %s311_s18 }
  0x2a   : > { %275 = vmatpush.msra.mxu0 %v251_v1  ;;  %454 = vmatpush.msra.mxu1 %v251_v1  ;;  %s600_s28 = sshra.s32 %s312_s18, 4  ;;  %s606_s30 = scalar_lea.hbm %s836_s2, 32  ;;  %s601_s28 = int_to_ptr.hbm [resolvable:$true] %s600_s28 }
  0x2b   : > { %443 = vmatmul.msk.f32.vlgmr.msra.gmra.mxu0 %vm253_vm0, %v249_v2  ;;  %444 = vmatmul.msk.f32.vlgmr.msra.gmra.mxu1 %vm253_vm0, %v250_v3  ;;  %s602_s19 = scalar_lea.hbm %s601_s28, 16  ;;  %p607_p7 = scmp.lt.s32.totalorder %s601_s28, %s836_s2 }
  0x2c   : > { %p603_p4 = scmp.ne.s32.totalorder %s601_s28, %s602_s19  ;;  %p608_p8 = scmp.lt.s32.totalorder %s606_s30, %s602_s19 }
  0x2e   : > { %p604_p5 = pnand %p603_p4, %p744_p9  ;;  %p609_p10 = por %p608_p8, %p607_p7 }
  0x30   : > { %p605_p6 = pneg %p604_p5 }
  0x32   : > { %p610_p13 = pnand %p609_p10, %p605_p6 }
  0xa8   : > { %v277_v4 = vpop.f32.mrf.mxu0  ;;  %v280_v5 = vpop.f32.mrf.mxu1 }
  0xa9   : > { %292 = vst [vmem:[%s237_s15] sm:$0xff] %v277_v4 }
  0xaa   : > { %293 = vst [vmem:[%s237_s15 + $0x8] sm:$0xff] %v280_v5 }
  0xab   : > { %613 = shalt.err (!%p610_p13)
}
  0xac   : > { %s676_s3 = smov 128   ;;  %s677_s7 = smov 8  }
  0xad   : > { %459 = dma.vmem_to_hbm [thread:$0]  (%p744_p9), %s310_s16, 256, %s312_s18, %s295_s20, %s676_s3, %s676_s3, %s677_s7  }
  0xae PF: > { %s326_s25 = sand.u32 1, %s652_s9   ;;  %p469_p0 = pnand %p432_p12, %p751_p11 }
  0xaf   : > { %s327_s26 = scalar_lea.sflag [#allocation5], %s326_s25 }
  0xb0   : > { %p470_p1 = pneg %p469_p0 }
  0xb2   : > { %647 = dma.done.wait (%p470_p1), %s327_s26, 256  }
  0xb3   : > { %649 = vsyncadd (%p470_p1), %s327_s26, 4294967040  ;;  %s21_s14 = sadd.s32 1, %s672_s14   ;;  %s842_s9 = smov %s656_s10 }
  0xb4   : > { %p18_p2 = scmp.ge.s32.totalorder %s21_s14, 4   ;;  %s843_s10 = smov %s660_s11 }
  0xb5   : > { %s844_s11 = smov %s749_s23  ;;  %s845_s12 = smov %s668_s13 }
  0xb6   : > { %s846_s13 = smov %s848_s17  ;;  %20 = sbr.rel (!%p18_p2) target bundleno = 8 (0x8), region = 94 }
  0xbb   :  { %333 = vsyncpa [#allocation4], 1 }
  0xbc   :  { %335 = vsyncpa [#allocation4 + $0x1], 1 }
  0xbd   :  { %336 = vsyncpa [#allocation7], 1 }
  0xbe   :  { %338 = vsyncpa [#allocation7 + $0x1], 1 }
  0xbf   :  { %339 = vsyncpa [#allocation5], 1 }
  0xc0   :  { %341 = vsyncpa [#allocation5 + $0x1], 1 }

</bundles_post_ra>
